<compile_context>
chip_gen: v6e
topology: v6e:2x2x1
jax: 0.10.0
libtpu: 0.0.40
codegen_flags: <defaults>
</compile_context>

<pallas_src>
import functools

import jax
import jax.numpy as jnp
from jax.experimental import pallas as pl
from jax.experimental.pallas import tpu as pltpu

LANE = 128          # TPU lane width (last vreg dim)
SUBLANE = 8         # f32 sublane width
NEG_BIG = -1e30     # effectively -inf for masked softmax lanes (kept in f32 bias)


def _round_up(n, m):
    return ((n + m - 1) // m) * m


def _policy_mlp_kernel(x_ref,
                       w1_ref, b1_ref,
                       w2_ref, b2_ref,
                       w3_ref, b3_ref,
                       out_ref,
                       *, activation: str):
    """Fused MLP forward for one batch tile: (Linear+act) x2 -> Linear -> Softmax.

    Padded action lanes are masked "for free": padded w3 columns are zero and the
    padded b3 lanes hold NEG_BIG, so those logits are NEG_BIG and exp() -> 0.
    """
    cdt = w1_ref.dtype  # matmul operand dtype (bf16 or f32); accumulation is f32

    def act(h):
        if activation == "relu":
            return jnp.maximum(h, 0.0)
        elif activation == "tanh":
            return jnp.tanh(h)
        raise ValueError("Invalid activation function. Please use 'relu' or 'tanh'.")

    x = x_ref[...]

    # Hidden layer 1 (bias add + activation in f32)
    h1 = act(jnp.dot(x, w1_ref[...], preferred_element_type=jnp.float32) + b1_ref[...])

    # Hidden layer 2
    h2 = act(jnp.dot(h1.astype(cdt), w2_ref[...],
                     preferred_element_type=jnp.float32) + b2_ref[...])

    # Output layer (logits), lane-padded to 128 actions; mask lives in b3.
    logits = jnp.dot(h2.astype(cdt), w3_ref[...],
                     preferred_element_type=jnp.float32) + b3_ref[...]

    # Numerically stable softmax; padded lanes end up exactly 0.
    m = jnp.max(logits, axis=-1, keepdims=True)
    e = jnp.exp(logits - m)
    denom = jnp.sum(e, axis=-1, keepdims=True)
    out_ref[...] = (e * pl.reciprocal(denom, approx=True)).astype(out_ref.dtype)


def prepare_params(params, matmul_dtype=jnp.bfloat16):
    """Zero-pad feature dims to the 128-lane width and cast matmul weights.

    Input params: w{i} [in, out], b{i} [1, out] (so the kernel computes
    y = x @ W + b, equivalent to PyTorch's x @ weight.T + bias).
    The state (input) dim of w1 stays unpadded so it matches x's last dim.
    For the output layer the padded bias lanes are set to NEG_BIG (f32) so the
    softmax mask is baked in and the kernel needs no iota/where.
    """
    padded = {}
    for i in (1, 2, 3):
        w = params[f"w{i}"]
        b = params[f"b{i}"]
        fin, fout = w.shape
        fin_p = fin if i == 1 else _round_up(fin, LANE)
        fout_p = _round_up(fout, LANE)
        wp = jnp.zeros((fin_p, fout_p), matmul_dtype)
        wp = wp.at[:fin, :fout].set(w.astype(matmul_dtype))
        if i == 3:
            bp = jnp.full((1, fout_p), NEG_BIG, jnp.float32)   # masked action lanes
        else:
            bp = jnp.zeros((1, fout_p), jnp.float32)
        bp = bp.at[:, :fout].set(b.reshape(1, fout).astype(jnp.float32))
        padded[f"w{i}"] = wp
        padded[f"b{i}"] = bp
    return padded


def policy_network_forward(x, padded_params, action_size, activation="relu",
                           block_batch=1024, matmul_dtype=jnp.bfloat16,
                           out_dtype=jnp.bfloat16):
    """Run the fused Pallas kernel over a batch-tiled grid.

    x:             [batch, state_size] float32
    padded_params: output of prepare_params(...)
    Returns [batch, action_size] float32 probabilities.
    """
    batch, state_size = x.shape
    a_pad = padded_params["w3"].shape[1]

    # Batch tile: aligned to sublane packing (16 rows for bf16 operands),
    # capped at block_batch; pad the batch so the grid covers it exactly.
    row_align = 16 if matmul_dtype == jnp.bfloat16 else SUBLANE
    tb = _round_up(min(block_batch, _round_up(batch, row_align)), row_align)

    # Keep >= 2 grid steps when the batch allows so both v7x TensorCores get
    # work (the "parallel" axis is the only thing sharding across them).
    if _round_up(batch, tb) // tb < 2:
        half = _round_up(pl.cdiv(batch, 2), row_align)
        if half < tb:
            tb = half

    padded_batch = _round_up(batch, tb)
    if padded_batch != batch:
        x = jnp.pad(x, ((0, padded_batch - batch), (0, 0)))
    x = x.astype(matmul_dtype)

    grid = (padded_batch // tb,)

    def rep(a):
        nd = a.ndim
        return pl.BlockSpec(a.shape, lambda i, _nd=nd: (0,) * _nd)   # resident block

    kernel = functools.partial(_policy_mlp_kernel, activation=activation)

    # Only very large tiles need an explicit VMEM budget (v7x: 64 MiB physical,
    # 32 MiB default scoped limit); small tiles stay under the default.
    vmem_limit = (64 << 20) if tb >= 4096 else None

    out_padded = pl.pallas_call(
        kernel,
        out_shape=jax.ShapeDtypeStruct((padded_batch, a_pad), out_dtype),
        grid=grid,
        in_specs=[
            pl.BlockSpec((tb, state_size), lambda i: (i, 0)),      # streamed x
            rep(padded_params["w1"]), rep(padded_params["b1"]),
            rep(padded_params["w2"]), rep(padded_params["b2"]),
            rep(padded_params["w3"]), rep(padded_params["b3"]),
        ],
        out_specs=pl.BlockSpec((tb, a_pad), lambda i: (i, 0)),     # lane-dense store
        compiler_params=pltpu.CompilerParams(
            dimension_semantics=("parallel",),
            vmem_limit_bytes=vmem_limit),
    )(x,
      padded_params["w1"], padded_params["b1"],
      padded_params["w2"], padded_params["b2"],
      padded_params["w3"], padded_params["b3"])

    # Slice away batch/action padding first, then upcast (cheap: [batch, A]).
    return out_padded[:batch, :action_size].astype(jnp.float32)


def init_params(key, state_size, hidden_sizes, action_size):
    """Deterministic synthetic init (PyTorch-style uniform fan-in bound)."""
    sizes = [state_size] + list(hidden_sizes) + [action_size]
    params = {}
    for i, (fan_in, fan_out) in enumerate(zip(sizes[:-1], sizes[1:]), start=1):
        key, kw, kb = jax.random.split(key, 3)
        bound = 1.0 / jnp.sqrt(fan_in)
        # Stored as [in, out] so the kernel does x @ W + b.
        params[f"w{i}"] = jax.random.uniform(
            kw, (fan_in, fan_out), jnp.float32, -bound, bound)
        params[f"b{i}"] = jax.random.uniform(
            kb, (1, fan_out), jnp.float32, -bound, bound)
    return params


def reference_forward(x, params, activation="relu"):
    """Pure-JAX reference (unpadded, f32) for correctness checks."""
    act = (lambda h: jnp.maximum(h, 0.0)) if activation == "relu" else jnp.tanh
    h = act(x @ params["w1"] + params["b1"])
    h = act(h @ params["w2"] + params["b2"])
    logits = h @ params["w3"] + params["b3"]
    return jax.nn.softmax(logits, axis=-1)


if __name__ == "__main__":
    # LunarLander-like sizes: state=8, actions=4, two hidden layers of 32.
    state_size = 8
    action_size = 4
    hidden_sizes = [32, 32]

    key = jax.random.PRNGKey(0)
    key, kx = jax.random.split(key)
    params = init_params(key, state_size, hidden_sizes, action_size)

    # --- accuracy path: small batch, f32 operands + f32 output --------------
    batch = 8
    x = jax.random.normal(kx, (batch, state_size), jnp.float32)
    pp_f32 = prepare_params(params, jnp.float32)

    out = policy_network_forward(x, pp_f32, action_size, activation="relu",
                                 matmul_dtype=jnp.float32, out_dtype=jnp.float32)
    out = jax.block_until_ready(out)
    ref = reference_forward(x, params, "relu")
    assert out.shape == (batch, action_size)
    # NOTE: pl.reciprocal(approx=True) -> rows sum to 1 only within tolerance.
    assert jnp.allclose(jnp.sum(out, axis=-1), 1.0, atol=1e-2)
    assert jnp.allclose(out, ref, atol=1e-2), float(jnp.max(jnp.abs(out - ref)))

    # tanh activation path
    out_t = jax.block_until_ready(
        policy_network_forward(x, pp_f32, action_size, activation="tanh",
                               matmul_dtype=jnp.float32, out_dtype=jnp.float32))
    ref_t = reference_forward(x, params, "tanh")
    assert jnp.allclose(out_t, ref_t, atol=1e-2)

    # --- fast path (defaults): bf16 MXU operands + bf16 store, gridded batch --
    key, kx2 = jax.random.split(key)
    batch2 = 512
    x2 = jax.random.normal(kx2, (batch2, state_size), jnp.float32)
    pp_bf16 = prepare_params(params)                  # bf16 is the default now
    out2 = policy_network_forward(x2, pp_bf16, action_size, activation="relu")
    out2 = jax.block_until_ready(out2)
    ref2 = reference_forward(x2, params, "relu")
    assert out2.shape == (batch2, action_size)
    assert jnp.allclose(jnp.sum(out2, axis=-1), 1.0, atol=2e-2)
    assert jnp.allclose(out2, ref2, atol=5e-2), float(jnp.max(jnp.abs(out2 - ref2)))

    print("KERNEL_OK")
</pallas_src>

<mosaic_0001>
module attributes {stable_mosaic.version = 11 : i64} {
  func.func @_policy_mlp_kernel(%arg0: i32, %arg1: memref<8x8xf32, #tpu.memory_space<vmem>>, %arg2: memref<8x128xf32, #tpu.memory_space<vmem>>, %arg3: memref<1x128xf32, #tpu.memory_space<vmem>>, %arg4: memref<128x128xf32, #tpu.memory_space<vmem>>, %arg5: memref<1x128xf32, #tpu.memory_space<vmem>>, %arg6: memref<128x128xf32, #tpu.memory_space<vmem>>, %arg7: memref<1x128xf32, #tpu.memory_space<vmem>>, %arg8: memref<8x128xf32, #tpu.memory_space<vmem>>) attributes {dimension_semantics = [#tpu.dimension_semantics<parallel>], iteration_bounds = array<i64: 1>, scalar_prefetch = 0 : i64, scratch_operands = 0 : i64, tpu.core_type = #tpu.core_type<tc>, window_params = [{transform_indices = @transform_0, window_bounds = array<i64: 8, 8>}, {pipeline_mode = #tpu.pipeline_mode<synchronous>, transform_indices = @transform_1, window_bounds = array<i64: 8, 128>}, {pipeline_mode = #tpu.pipeline_mode<synchronous>, transform_indices = @transform_2, window_bounds = array<i64: 1, 128>}, {pipeline_mode = #tpu.pipeline_mode<synchronous>, transform_indices = @transform_3, window_bounds = array<i64: 128, 128>}, {pipeline_mode = #tpu.pipeline_mode<synchronous>, transform_indices = @transform_4, window_bounds = array<i64: 1, 128>}, {pipeline_mode = #tpu.pipeline_mode<synchronous>, transform_indices = @transform_5, window_bounds = array<i64: 128, 128>}, {pipeline_mode = #tpu.pipeline_mode<synchronous>, transform_indices = @transform_6, window_bounds = array<i64: 1, 128>}, {transform_indices = @transform_7, window_bounds = array<i64: 8, 128>}]} {
    %c0 = arith.constant 0 : index
    %c0_0 = arith.constant 0 : index
    %0 = vector.load %arg1[%c0, %c0_0] : memref<8x8xf32, #tpu.memory_space<vmem>>, vector<8x8xf32>
    %c0_1 = arith.constant 0 : index
    %c0_2 = arith.constant 0 : index
    %1 = vector.load %arg2[%c0_1, %c0_2] : memref<8x128xf32, #tpu.memory_space<vmem>>, vector<8x128xf32>
    %cst = arith.constant dense<0.000000e+00> : vector<8x128xf32>
    %2 = tpu.matmul %0, %1, %cst {dimension_numbers = #tpu.dot_dimension_numbers<[1], [0], [0], [1], [0, 0, 1, 1], [], []>} : vector<8x8xf32>, vector<8x128xf32>, vector<8x128xf32> -> vector<8x128xf32>
    %c0_3 = arith.constant 0 : index
    %c0_4 = arith.constant 0 : index
    %3 = vector.load %arg3[%c0_3, %c0_4] : memref<1x128xf32, #tpu.memory_space<vmem>>, vector<1x128xf32>
    %4 = vector.broadcast %3 : vector<1x128xf32> to vector<8x128xf32>
    %5 = arith.addf %2, %4 : vector<8x128xf32>
    %cst_5 = arith.constant 0.000000e+00 : f32
    %6 = vector.broadcast %cst_5 : f32 to vector<8x128xf32>
    %7 = arith.maximumf %5, %6 : vector<8x128xf32>
    %c0_6 = arith.constant 0 : index
    %c0_7 = arith.constant 0 : index
    %8 = vector.load %arg4[%c0_6, %c0_7] : memref<128x128xf32, #tpu.memory_space<vmem>>, vector<128x128xf32>
    %cst_8 = arith.constant dense<0.000000e+00> : vector<8x128xf32>
    %9 = tpu.matmul %7, %8, %cst_8 {dimension_numbers = #tpu.dot_dimension_numbers<[1], [0], [0], [1], [0, 0, 1, 1], [], []>} : vector<8x128xf32>, vector<128x128xf32>, vector<8x128xf32> -> vector<8x128xf32>
    %c0_9 = arith.constant 0 : index
    %c0_10 = arith.constant 0 : index
    %10 = vector.load %arg5[%c0_9, %c0_10] : memref<1x128xf32, #tpu.memory_space<vmem>>, vector<1x128xf32>
    %11 = vector.broadcast %10 : vector<1x128xf32> to vector<8x128xf32>
    %12 = arith.addf %9, %11 : vector<8x128xf32>
    %cst_11 = arith.constant 0.000000e+00 : f32
    %13 = vector.broadcast %cst_11 : f32 to vector<8x128xf32>
    %14 = arith.maximumf %12, %13 : vector<8x128xf32>
    %c0_12 = arith.constant 0 : index
    %c0_13 = arith.constant 0 : index
    %15 = vector.load %arg6[%c0_12, %c0_13] : memref<128x128xf32, #tpu.memory_space<vmem>>, vector<128x128xf32>
    %cst_14 = arith.constant dense<0.000000e+00> : vector<8x128xf32>
    %16 = tpu.matmul %14, %15, %cst_14 {dimension_numbers = #tpu.dot_dimension_numbers<[1], [0], [0], [1], [0, 0, 1, 1], [], []>} : vector<8x128xf32>, vector<128x128xf32>, vector<8x128xf32> -> vector<8x128xf32>
    %c0_15 = arith.constant 0 : index
    %c0_16 = arith.constant 0 : index
    %17 = vector.load %arg7[%c0_15, %c0_16] : memref<1x128xf32, #tpu.memory_space<vmem>>, vector<1x128xf32>
    %18 = vector.broadcast %17 : vector<1x128xf32> to vector<8x128xf32>
    %19 = arith.addf %16, %18 : vector<8x128xf32>
    %cst_17 = arith.constant dense<0xFF800000> : vector<8xf32>
    %20 = vector.multi_reduction <maximumf>, %19, %cst_17 [1] : vector<8x128xf32> to vector<8xf32>
    %21 = vector.shape_cast %20 : vector<8xf32> to vector<8x1xf32>
    %22 = vector.broadcast %21 : vector<8x1xf32> to vector<8x128xf32>
    %23 = arith.subf %19, %22 : vector<8x128xf32>
    %24 = math.exp %23 : vector<8x128xf32>
    %cst_18 = arith.constant dense<0.000000e+00> : vector<8xf32>
    %25 = vector.multi_reduction <add>, %24, %cst_18 [1] : vector<8x128xf32> to vector<8xf32>
    %26 = vector.shape_cast %25 : vector<8xf32> to vector<8x1xf32>
    %27 = tpu.reciprocal %26 {approx = true} : vector<8x1xf32> -> vector<8x1xf32>
    %28 = vector.broadcast %27 : vector<8x1xf32> to vector<8x128xf32>
    %29 = arith.mulf %24, %28 : vector<8x128xf32>
    %c0_19 = arith.constant 0 : index
    %c0_20 = arith.constant 0 : index
    %30 = vector.load %arg8[%c0_19, %c0_20] : memref<8x128xf32, #tpu.memory_space<vmem>>, vector<8x128xf32>
    tpu.vector_store %arg8[%c0_19, %c0_20], %29 {strides = array<i32>} : memref<8x128xf32, #tpu.memory_space<vmem>>, vector<8x128xf32>,
    return
  }
  func.func @transform_0(%arg0: i32) -> (i32, i32) {
    %c0_i32 = arith.constant 0 : i32
    %c0_i32_0 = arith.constant 0 : i32
    return %arg0, %c0_i32 : i32, i32
  }
  func.func @transform_1(%arg0: i32) -> (i32, i32) {
    %c0_i32 = arith.constant 0 : i32
    %c0_i32_0 = arith.constant 0 : i32
    %c0_i32_1 = arith.constant 0 : i32
    return %c0_i32, %c0_i32_0 : i32, i32
  }
  func.func @transform_2(%arg0: i32) -> (i32, i32) {
    %c0_i32 = arith.constant 0 : i32
    %c0_i32_0 = arith.constant 0 : i32
    %c0_i32_1 = arith.constant 0 : i32
    return %c0_i32, %c0_i32_0 : i32, i32
  }
  func.func @transform_3(%arg0: i32) -> (i32, i32) {
    %c0_i32 = arith.constant 0 : i32
    %c0_i32_0 = arith.constant 0 : i32
    %c0_i32_1 = arith.constant 0 : i32
    return %c0_i32, %c0_i32_0 : i32, i32
  }
  func.func @transform_4(%arg0: i32) -> (i32, i32) {
    %c0_i32 = arith.constant 0 : i32
    %c0_i32_0 = arith.constant 0 : i32
    %c0_i32_1 = arith.constant 0 : i32
    return %c0_i32, %c0_i32_0 : i32, i32
  }
  func.func @transform_5(%arg0: i32) -> (i32, i32) {
    %c0_i32 = arith.constant 0 : i32
    %c0_i32_0 = arith.constant 0 : i32
    %c0_i32_1 = arith.constant 0 : i32
    return %c0_i32, %c0_i32_0 : i32, i32
  }
  func.func @transform_6(%arg0: i32) -> (i32, i32) {
    %c0_i32 = arith.constant 0 : i32
    %c0_i32_0 = arith.constant 0 : i32
    %c0_i32_1 = arith.constant 0 : i32
    return %c0_i32, %c0_i32_0 : i32, i32
  }
  func.func @transform_7(%arg0: i32) -> (i32, i32) {
    %c0_i32 = arith.constant 0 : i32
    %c0_i32_0 = arith.constant 0 : i32
    return %arg0, %c0_i32 : i32, i32
  }
}

</mosaic_0001>

<bundles_post_ra>
// kernel: tpu_custom_call.1
= control target key start
LH: loop header
LB: loop body
LE: loop exit
PB: predicated region body
PF: predicated region fallthrough
CT: control target
= control target key end

     0   :  { %12 = vsyncpa [#allocation3], 0  ;;  %s724_s0 = inlined_call_operand.hbm [shape: f32[8,8], index: 0, kind: input, shape index: {}]   ;;  %s725_s1 = inlined_call_operand.hbm [shape: f32[8,128], index: 1, kind: input, shape index: {}]   ;;  %s726_s2 = inlined_call_operand.vmem [shape: f32[1,128], index: 2, kind: input, shape index: {}]   ;;  %s727_s3 = inlined_call_operand.hbm [shape: f32[128,128], index: 3, kind: input, shape index: {}]   ;;  %s728_s4 = inlined_call_operand.vmem [shape: f32[1,128], index: 4, kind: input, shape index: {}]   ;;  %s729_s5 = inlined_call_operand.hbm [shape: f32[128,128], index: 5, kind: input, shape index: {}]   ;;  %s730_s6 = inlined_call_operand.vmem [shape: f32[1,128], index: 6, kind: input, shape index: {}]   ;;  %s731_s7 = inlined_call_operand.hbm [shape: f32[8,128], index: 7, kind: output, shape index: {}]  }
   0x1   :  { %13 = vsyncpa [#allocation6], 0 }
   0x2   :  { %14 = vsyncpa [#allocation9], 0 }
   0x3   :  { %15 = vsyncpa [#allocation4], 0  ;;  %s612_s24 = smov [#allocation5]   ;;  %s613_s26 = smov [#allocation2]  }
   0x4   :  { %s32_s25 = sshll.u32 %s612_s24, 4  ;;  %s22_s27 = sshll.u32 %s613_s26, 4  ;;  %s33_s25 = int_to_ptr.vmem [resolvable:$true] %s32_s25  ;;  %s23_s27 = int_to_ptr.vmem [resolvable:$true] %s22_s27 }
   0x5   :  { %s512_s28 = scalar_lea.vmem %s33_s25, 128  ;;  %p517_p1 = scmp.lt.s32.totalorder %s33_s25, %s33_s25 }
   0x6   :  { %p513_p0 = scmp.ne.s32.totalorder %s33_s25, %s512_s28  ;;  %p518_p2 = scmp.lt.s32.totalorder %s512_s28, %s512_s28 }
   0x8   :  { %p519_p3 = por %p518_p2, %p517_p1 }
   0xa   :  { %p520_p4 = pnand %p519_p3, %p513_p0 }
   0xc   :  { %523 = shalt.err (!%p520_p4)
}
   0xd   :  { %35 = dma.hbm_to_vmem [thread:$0]  %s725_s1, 128, %s33_s25, [#allocation6]  }
   0xe   :  { %s532_s8 = scalar_lea.vmem %s23_s27, 128  ;;  %p537_p6 = scmp.lt.s32.totalorder %s23_s27, %s23_s27 }
   0xf   :  { %p533_p5 = scmp.ne.s32.totalorder %s23_s27, %s532_s8  ;;  %p538_p7 = scmp.lt.s32.totalorder %s532_s8, %s532_s8 }
  0x11   :  { %p539_p8 = por %p538_p7, %p537_p6 }
  0x13   :  { %p540_p9 = pnand %p539_p8, %p533_p5 }
  0x15   :  { %543 = shalt.err (!%p540_p9)
}
  0x16   :  { %25 = dma.hbm_to_vmem [thread:$0]  %s724_s0, 128, %s23_s27, [#allocation3]  }
  0x17   :  { %s614_s11 = smov [#allocation7]  }
  0x18   :  { %s43_s12 = sshll.u32 %s614_s11, 4  ;;  %s44_s12 = int_to_ptr.vmem [resolvable:$true] %s43_s12 }
  0x19   :  { %s552_s13 = scalar_lea.vmem %s44_s12, 2048  ;;  %p557_p11 = scmp.lt.s32.totalorder %s44_s12, %s44_s12 }
  0x1a   :  { %p553_p10 = scmp.ne.s32.totalorder %s44_s12, %s552_s13  ;;  %p558_p12 = scmp.lt.s32.totalorder %s552_s13, %s552_s13 }
  0x1c   :  { %p559_p13 = por %p558_p12, %p557_p11 }
  0x1e   :  { %p560_p0 = pnand %p559_p13, %p553_p10 }
  0x20   :  { %563 = shalt.err (!%p560_p0)
}
  0x21   :  { %s615_s1 = smov 128   ;;  %s616_s14 = smov 8  }
  0x22   :  { %49 = dma.hbm_to_vmem [thread:$0]  %s727_s3, 2048, %s44_s12, [#allocation6], %s615_s1, %s615_s1, %s616_s14  }
  0x23   :  { %s617_s17 = smov [#allocation8]  }
  0x24   :  { %s57_s18 = sshll.u32 %s617_s17, 4  ;;  %s58_s18 = int_to_ptr.vmem [resolvable:$true] %s57_s18 }
  0x25   :  { %s572_s0 = scalar_lea.vmem %s58_s18, 2048  ;;  %p577_p2 = scmp.lt.s32.totalorder %s58_s18, %s58_s18 }
  0x26   :  { %p573_p1 = scmp.ne.s32.totalorder %s58_s18, %s572_s0  ;;  %p578_p3 = scmp.lt.s32.totalorder %s572_s0, %s572_s0 }
  0x28   :  { %p579_p4 = por %p578_p3, %p577_p2 }
  0x2a   :  { %p580_p5 = pnand %p579_p4, %p573_p1 }
  0x2c   :  { %583 = shalt.err (!%p580_p5)
}
  0x2d   :  { %63 = dma.hbm_to_vmem [thread:$0]  %s729_s5, 2048, %s58_s18, [#allocation9], %s615_s1, %s615_s1, %s616_s14  }
  0x2e   :  { %604 = dma.done.wait [#allocation3], 128  }
  0x2f   :  { %605 = vsyncadd [#allocation3], 4294967168 }
  0x30   :  { %606 = dma.done.wait [#allocation6], 2176  }
  0x31   :  { %607 = vsyncadd [#allocation6], 4294965120 }
  0x32   :  { %608 = dma.done.wait [#allocation9], 2048  }
  0x33   :  { %609 = vsyncadd [#allocation9], 4294965248  ;;  %v618_v0 = vmov 0.0   ;;  %vm619_vm0 = vmmov 0   ;;  %vm87_vm1 = vcmask 64512   ;;  %v79_v1 = vld [vmem:[#allocation5] sm:$0xff] }
  0x34   :  { %416 = vmatprep.subr.mxu0 %v618_v0  ;;  %418 = vmatprep.mubr.msk.f32.mxu0 %vm619_vm0, %v618_v0  ;;  %v78_v2 = vld [vmem:[#allocation2] sm:$0xff]  ;;  %v177_v3 = vld [vmem:[#allocation7 + $0x78] sm:$0xff]  ;;  %v175_v5 = vld [vmem:[#allocation7 + $0x68] sm:$0xff] }
  0x35   :  { %421 = vmatprep.subr.mxu1 %v618_v0  ;;  %453 = vmatprep.mubr.msk.f32.mxu1 %vm619_vm0, %v618_v0  ;;  %v176_v4 = vld [vmem:[#allocation7 + $0x70] sm:$0xff]  ;;  %v174_v6 = vld [vmem:[#allocation7 + $0x60] sm:$0xff]  ;;  %v173_v7 = vld [vmem:[#allocation7 + $0x58] sm:$0xff] }
  0x36   :  { %417 = vmatpush3.msra.mxu0 %v79_v1  ;;  %422 = vmatpush3.msra.mxu1 %v177_v3  ;;  %v172_v8 = vld [vmem:[#allocation7 + $0x50] sm:$0xff]  ;;  %v171_v9 = vld [vmem:[#allocation7 + $0x48] sm:$0xff]  ;;  %v170_v10 = vld [vmem:[#allocation7 + $0x40] sm:$0xff] }
  0x37   :  { %419 = vmatmul.mubr.msk.f32.vlgmr.msra.gmra.mxu0 %vm87_vm1, %v78_v2  ;;  %423 = vmatprep.subr.mxu1 %v618_v0  ;;  %v169_v11 = vld [vmem:[#allocation7 + $0x38] sm:$0xff]  ;;  %v168_v12 = vld [vmem:[#allocation7 + $0x30] sm:$0xff]  ;;  %v167_v13 = vld [vmem:[#allocation7 + $0x28] sm:$0xff] }
  0x38   :  { %424 = vmatpush3.msra.mxu1 %v176_v4  ;;  %456 = vmatprep.subr.mxu0 %v618_v0  ;;  %v166_v14 = vld [vmem:[#allocation7 + $0x20] sm:$0xff]  ;;  %v165_v15 = vld [vmem:[#allocation7 + $0x18] sm:$0xff]  ;;  %v164_v16 = vld [vmem:[#allocation7 + $0x10] sm:$0xff] }
  0x39   :  { %425 = vmatprep.subr.mxu1 %v618_v0  ;;  %488 = vmatprep.mubr.msk.f32.mxu0 %vm619_vm0, %v618_v0  ;;  %v163_v17 = vld [vmem:[#allocation7 + $0x8] sm:$0xff]  ;;  %v162_v18 = vld [vmem:[#allocation7] sm:$0xff]  ;;  %v271_v19 = vld [vmem:[#allocation8 + $0x78] sm:$0xff] }
  0x3a   :  { %426 = vmatpush3.msra.mxu1 %v175_v5  ;;  %v270_v20 = vld [vmem:[#allocation8 + $0x70] sm:$0xff]  ;;  %457 = vmatpush3.msra.mxu0 %v271_v19  ;;  %v269_v21 = vld [vmem:[#allocation8 + $0x68] sm:$0xff]  ;;  %v268_v22 = vld [vmem:[#allocation8 + $0x60] sm:$0xff] }
  0x3b   :  { %427 = vmatprep.subr.mxu1 %v618_v0  ;;  %458 = vmatprep.subr.mxu0 %v618_v0  ;;  %v267_v23 = vld [vmem:[#allocation8 + $0x58] sm:$0xff]  ;;  %v266_v24 = vld [vmem:[#allocation8 + $0x50] sm:$0xff]  ;;  %v265_v25 = vld [vmem:[#allocation8 + $0x48] sm:$0xff] }
  0x3c   :  { %428 = vmatpush3.msra.mxu1 %v174_v6  ;;  %459 = vmatpush3.msra.mxu0 %v270_v20  ;;  %v264_v26 = vld [vmem:[#allocation8 + $0x40] sm:$0xff]  ;;  %v263_v27 = vld [vmem:[#allocation8 + $0x38] sm:$0xff]  ;;  %v262_v28 = vld [vmem:[#allocation8 + $0x30] sm:$0xff] }
  0x3d   :  { %429 = vmatprep.subr.mxu1 %v618_v0  ;;  %460 = vmatprep.subr.mxu0 %v618_v0  ;;  %v261_v29 = vld [vmem:[#allocation8 + $0x28] sm:$0xff]  ;;  %v260_v30 = vld [vmem:[#allocation8 + $0x20] sm:$0xff]  ;;  %v259_v31 = vld [vmem:[#allocation8 + $0x18] sm:$0xff] }
  0x3e   :  { %430 = vmatpush3.msra.mxu1 %v173_v7  ;;  %461 = vmatpush3.msra.mxu0 %v269_v21  ;;  %v376_v32 = vld [vmem:[%s726_s2] ss:$0 sm:$0xff]  ;;  %v257_v38 = vld [vmem:[#allocation8 + $0x8] sm:$0xff]  ;;  %v256_v39 = vld [vmem:[#allocation8] sm:$0xff] }
  0x3f   :  { %431 = vmatprep.subr.mxu1 %v618_v0  ;;  %462 = vmatprep.subr.mxu0 %v618_v0  ;;  %v258_v37 = vld [vmem:[#allocation8 + $0x10] sm:$0xff] }
  0x40   :  { %432 = vmatpush3.msra.mxu1 %v172_v8  ;;  %463 = vmatpush3.msra.mxu0 %v268_v22  ;;  %v378_v40 = vld [vmem:[%s728_s4] ss:$0 sm:$0xff]  ;;  %s620_s4 = smov [#allocation10]  }
  0x41   :  { %433 = vmatprep.subr.mxu1 %v618_v0  ;;  %464 = vmatprep.subr.mxu0 %v618_v0  ;;  %v379_v45 = vld [vmem:[%s730_s6] ss:$0 sm:$0xff]  ;;  %s365_s24 = sshll.u32 %s620_s4, 4  ;;  %s366_s24 = int_to_ptr.vmem [resolvable:$true] %s365_s24 }
  0x42   :  { %434 = vmatpush3.msra.mxu1 %v171_v9  ;;  %465 = vmatpush3.msra.mxu0 %v267_v23  ;;  %s584_s25 = scalar_lea.vmem %s366_s24, 128  ;;  %p589_p7 = scmp.lt.s32.totalorder %s366_s24, %s366_s24 }
  0x43   :  { %435 = vmatprep.subr.mxu1 %v618_v0  ;;  %466 = vmatprep.subr.mxu0 %v618_v0  ;;  %p585_p6 = scmp.ne.s32.totalorder %s366_s24, %s584_s25  ;;  %p590_p8 = scmp.lt.s32.totalorder %s584_s25, %s584_s25 }
  0x44   :  { %436 = vmatpush3.msra.mxu1 %v170_v10  ;;  %467 = vmatpush3.msra.mxu0 %v266_v24 }
  0x45   :  { %437 = vmatprep.subr.mxu1 %v618_v0  ;;  %468 = vmatprep.subr.mxu0 %v618_v0  ;;  %p591_p9 = por %p590_p8, %p589_p7 }
  0x46   :  { %438 = vmatpush3.msra.mxu1 %v169_v11  ;;  %469 = vmatpush3.msra.mxu0 %v265_v25 }
  0x47   :  { %439 = vmatprep.subr.mxu1 %v618_v0  ;;  %470 = vmatprep.subr.mxu0 %v618_v0  ;;  %p592_p10 = pnand %p591_p9, %p585_p6 }
  0x48   :  { %440 = vmatpush3.msra.mxu1 %v168_v12  ;;  %471 = vmatpush3.msra.mxu0 %v264_v26 }
  0x49   :  { %441 = vmatprep.subr.mxu1 %v618_v0  ;;  %472 = vmatprep.subr.mxu0 %v618_v0 }
  0x4a   :  { %442 = vmatpush3.msra.mxu1 %v167_v13  ;;  %473 = vmatpush3.msra.mxu0 %v263_v27 }
  0x4b   :  { %443 = vmatprep.subr.mxu1 %v618_v0  ;;  %474 = vmatprep.subr.mxu0 %v618_v0 }
  0x4c   :  { %444 = vmatpush3.msra.mxu1 %v166_v14  ;;  %475 = vmatpush3.msra.mxu0 %v262_v28 }
  0x4d   :  { %445 = vmatprep.subr.mxu1 %v618_v0  ;;  %476 = vmatprep.subr.mxu0 %v618_v0 }
  0x4e   :  { %446 = vmatpush3.msra.mxu1 %v165_v15  ;;  %477 = vmatpush3.msra.mxu0 %v261_v29 }
  0x4f   :  { %447 = vmatprep.subr.mxu1 %v618_v0  ;;  %478 = vmatprep.subr.mxu0 %v618_v0 }
  0x50   :  { %448 = vmatpush3.msra.mxu1 %v164_v16  ;;  %479 = vmatpush3.msra.mxu0 %v260_v30 }
  0x51   :  { %449 = vmatprep.subr.mxu1 %v618_v0  ;;  %480 = vmatprep.subr.mxu0 %v618_v0 }
  0x52   :  { %450 = vmatpush3.msra.mxu1 %v163_v17  ;;  %481 = vmatpush3.msra.mxu0 %v259_v31 }
  0x53   :  { %451 = vmatprep.subr.mxu1 %v618_v0  ;;  %482 = vmatprep.subr.mxu0 %v618_v0 }
  0x54   :  { %452 = vmatpush3.msra.mxu1 %v162_v18  ;;  %483 = vmatpush3.msra.mxu0 %v258_v37 }
  0x55   :  { %484 = vmatprep.subr.mxu0 %v618_v0 }
  0x56   :  { %485 = vmatpush3.msra.mxu0 %v257_v38 }
  0x57   :  { %486 = vmatprep.subr.mxu0 %v618_v0 }
  0x58   :  { %487 = vmatpush3.msra.mxu0 %v256_v39 }
  0xf7   :  { %v157_v33 = vpop.f32.mrf.mxu0 }
  0xf8   :  { %v158_v34 = vadd.f32 %v376_v32, %v157_v33 }
  0xf9   :  { %v420_v35 = vpop.f32.mrf.mxu0 }
  0xfa   :  { %v161_v36 = vmax.f32 %v158_v34, 0.0 }
  0xfc   :  { %454 = vmatmul.mubr.f32.vlgmr.msra.gmra.mxu1 %v161_v36 }
 0x1bc   :  { %v251_v41 = vpop.f32.mrf.mxu1 }
 0x1bd   :  { %v252_v42 = vadd.f32 %v378_v40, %v251_v41 }
 0x1be   :  { %v455_v43 = vpop.f32.mrf.mxu1 }
 0x1bf   :  { %v255_v44 = vmax.f32 %v252_v42, 0.0 }
 0x1c1   :  { %489 = vmatmul.mubr.f32.vlgmr.msra.gmra.mxu0 %v255_v44 }
 0x281   :  { %v345_v46 = vpop.f32.mrf.mxu0 }
 0x282   :  { %v346_v47 = vadd.f32 %v379_v45, %v345_v46 }
 0x283   :  { %v490_v48 = vpop.f32.mrf.mxu0 }
 0x284   :  { %349 = vmax.xlane.f32.xlu0 %v346_v47 }
 0x30d   :  { %v350_v49 = vpop.xlane.xlu0 %349 }
 0x30e   :  { %v351_v50 = vsub.f32 %v346_v47, %v350_v49 }
 0x310   :  { %v352_v51 = vmul.f32 1.442695, %v351_v50 }
 0x312   :  { %500 = vpow2.f32 %v352_v51 }
 0x31f   :  { %v501_v52 = vpop.eup %500 }
 0x320   :  { %354 = vadd.xlane.f32.xlu0 %v501_v52 }
 0x3a9   :  { %v355_v53 = vpop.xlane.xlu0 %354 }
 0x3aa   :  { %502 = vrcp.f32 %v355_v53 }
 0x3b7   :  { %v503_v54 = vpop.eup %502 }
 0x3b8   :  { %v357_v55 = vmul.f32 %v503_v54, %v501_v52 }
 0x3ba   :  { %358 = vst [vmem:[#allocation10] sm:$0xff] %v357_v55 }
 0x3bb   :  { %595 = shalt.err (!%p592_p10)
}
 0x3bc   :  { %368 = dma.vmem_to_hbm [thread:$0]  %s366_s24, 128, %s731_s7, [#allocation4]  }
 0x3bd   :  { %610 = dma.done.wait [#allocation4], 128  }
 0x3be   :  { %611 = vsyncadd [#allocation4], 4294967168 }
 0x3bf   :  { %372 = vsyncpa [#allocation3], 1 }
 0x3c0   :  { %373 = vsyncpa [#allocation6], 1 }
 0x3c1   :  { %374 = vsyncpa [#allocation9], 1 }
 0x3c2   :  { %375 = vsyncpa [#allocation4], 1 }

</bundles_post_ra>
